<compile_context>
chip_gen: v6e
topology: v6e:2x2x1
jax: 0.10.0
libtpu: 0.0.40
codegen_flags: <defaults>
</compile_context>

<pallas_src>
import math

import numpy as np

import jax
import jax.numpy as jnp
from jax.experimental import pallas as pl
from jax.experimental.pallas import tpu as pltpu


def _sine_embed_kernel(y_ref, x_ref, cy_ref, cx_ref, ph_ref, out_ref):
    """out[0, c, p] = sin(y[p]*cy[c] + x[p]*cx[c] + phase[c]).

    y_ref / x_ref : (1, 1, HW) flattened row/col embeds (lane dim = HW)
    cy/cx/ph_ref  : (tc, 1) per-channel constants (1/dim_t or 0, phase)
    out_ref       : (1, tc, HW)
    """
    y = y_ref[0]                         # (1, HW)
    x = x_ref[0]                         # (1, HW)
    arg = y * cy_ref[...] + x * cx_ref[...] + ph_ref[...]   # (tc, HW)
    out_ref[0] = jnp.sin(arg).astype(out_ref.dtype)


def _pick_channel_tile(C, HW, bytes_per_elem, target_bytes=4 << 20):
    """Largest channel tile (divisor of C, multiple of 8, or C itself) whose
    output block stays under ~target_bytes."""
    if C * HW * bytes_per_elem <= target_bytes:
        return C
    best = None
    for tc in range(8, C, 8):
        if C % tc == 0 and tc * HW * bytes_per_elem <= target_bytes:
            best = tc
    return best if best is not None else C


def position_embedding_sine(x, mask=None, *, num_pos_feats=64,
                            temperature=10000, normalize=False, scale=None,
                            out_dtype=jnp.float32):
    """Pallas TPU implementation of PositionEmbeddingSine.forward.

    x: (B, C, H, W) array (only its shape is used).
    mask: optional (B, H, W) bool array; None means "no padding".
    Returns: (B, 2 * num_pos_feats, H, W), dtype=out_dtype (float32 default;
    pass jnp.bfloat16 to halve HBM writeback if the consumer tolerates it).
    """
    if scale is not None and normalize is False:
        raise ValueError("normalize should be True if scale is passed")
    if scale is None:
        scale = 2 * math.pi

    B, _, H, W = x.shape
    F = num_pos_feats
    C = 2 * F
    HW = H * W
    eps = 1e-6

    # ---- trace-time per-channel constants (float64 numpy, no in-kernel exp) --
    k = np.arange(F, dtype=np.float64)
    dim_t = float(temperature) ** (2.0 * np.floor(k / 2.0) / float(F))
    inv_dim_t = 1.0 / dim_t
    phase_half = np.where(k % 2 == 1, np.pi / 2.0, 0.0)      # cos = sin(+pi/2)
    cy = np.concatenate([inv_dim_t, np.zeros(F)]).reshape(C, 1)
    cx = np.concatenate([np.zeros(F), inv_dim_t]).reshape(C, 1)
    ph = np.concatenate([phase_half, phase_half]).reshape(C, 1)
    cy = jnp.asarray(cy, dtype=jnp.float32)
    cx = jnp.asarray(cx, dtype=jnp.float32)
    ph = jnp.asarray(ph, dtype=jnp.float32)

    # ---- cheap O(B*H*W) embed preprocessing (1/(2F) of total work) ----------
    if mask is None:
        # Batch-independent; no mask DMA, no cumsum: embeds are scaled aranges.
        y_emb = jnp.arange(1, H + 1, dtype=jnp.float32)            # (H,)
        x_emb = jnp.arange(1, W + 1, dtype=jnp.float32)            # (W,)
        if normalize:
            y_emb = y_emb / (H + eps) * scale
            x_emb = x_emb / (W + eps) * scale
        y_flat = jnp.broadcast_to(y_emb[:, None], (H, W)).reshape(1, 1, HW)
        x_flat = jnp.broadcast_to(x_emb[None, :], (H, W)).reshape(1, 1, HW)
        Beff = 1
    else:
        not_mask = 1.0 - mask.astype(jnp.float32)                  # (B, H, W)
        y_emb = jnp.cumsum(not_mask, axis=1)
        x_emb = jnp.cumsum(not_mask, axis=2)
        if normalize:
            y_emb = y_emb / (y_emb[:, -1:, :] + eps) * scale
            x_emb = x_emb / (x_emb[:, :, -1:] + eps) * scale
        y_flat = y_emb.reshape(B, 1, HW)
        x_flat = x_emb.reshape(B, 1, HW)
        Beff = B

    # ---- lane-dense Pallas kernel over (batch, channel-tile) grid -----------
    tc = _pick_channel_tile(C, HW, jnp.dtype(out_dtype).itemsize)
    n_ct = C // tc

    out = pl.pallas_call(
        _sine_embed_kernel,
        out_shape=jax.ShapeDtypeStruct((Beff, C, HW), out_dtype),
        grid_spec=pltpu.PrefetchScalarGridSpec(
            num_scalar_prefetch=0,
            grid=(Beff, n_ct),
            in_specs=[
                pl.BlockSpec((1, 1, HW), lambda b, ct: (b, 0, 0)),   # y_flat
                pl.BlockSpec((1, 1, HW), lambda b, ct: (b, 0, 0)),   # x_flat
                pl.BlockSpec((tc, 1), lambda b, ct: (ct, 0)),        # cy
                pl.BlockSpec((tc, 1), lambda b, ct: (ct, 0)),        # cx
                pl.BlockSpec((tc, 1), lambda b, ct: (ct, 0)),        # phase
            ],
            out_specs=pl.BlockSpec((1, tc, HW), lambda b, ct: (b, ct, 0)),
        ),
        compiler_params=pltpu.CompilerParams(
            dimension_semantics=("parallel", "parallel"),
            vmem_limit_bytes=32 * 1024 * 1024,
        ),
    )(y_flat, x_flat, cy, cx, ph)

    pos = out.reshape(Beff, C, H, W)          # contiguous reshape, no transpose
    if Beff != B:
        pos = jnp.broadcast_to(pos, (B, C, H, W))
    return pos


def _reference(x, mask=None, *, num_pos_feats=64, temperature=10000,
               normalize=False, scale=None):
    """Pure-JAX transcription of the PyTorch forward, for verification."""
    if scale is None:
        scale = 2 * math.pi
    B, _, H, W = x.shape
    if mask is None:
        mask = jnp.zeros((B, H, W), dtype=bool)
    not_mask = (~mask).astype(jnp.float32)
    y_embed = jnp.cumsum(not_mask, axis=1)
    x_embed = jnp.cumsum(not_mask, axis=2)
    if normalize:
        eps = 1e-6
        y_embed = y_embed / (y_embed[:, -1:, :] + eps) * scale
        x_embed = x_embed / (x_embed[:, :, -1:] + eps) * scale
    dim_t = jnp.arange(num_pos_feats, dtype=jnp.float32)
    dim_t = temperature ** (2 * (dim_t // 2) / num_pos_feats)
    pos_x = x_embed[:, :, :, None] / dim_t
    pos_y = y_embed[:, :, :, None] / dim_t
    pos_x = jnp.stack((jnp.sin(pos_x[:, :, :, 0::2]),
                       jnp.cos(pos_x[:, :, :, 1::2])), axis=4).reshape(B, H, W, -1)
    pos_y = jnp.stack((jnp.sin(pos_y[:, :, :, 0::2]),
                       jnp.cos(pos_y[:, :, :, 1::2])), axis=4).reshape(B, H, W, -1)
    pos = jnp.concatenate((pos_y, pos_x), axis=3).transpose(0, 3, 1, 2)
    return pos


if __name__ == "__main__":
    key = jax.random.PRNGKey(0)
    B, Cin, H, W = 2, 4, 16, 16
    num_pos_feats = 16  # -> 32 output channels

    kx, km = jax.random.split(key)
    x = jax.random.normal(kx, (B, Cin, H, W), dtype=jnp.float32)

    # 1) Default path (mask=None, normalize=False), same as the PyTorch module
    #    constructed with PositionEmbeddingSine(num_pos_feats=16).
    pos = jax.block_until_ready(
        position_embedding_sine(x, num_pos_feats=num_pos_feats))
    ref = _reference(x, num_pos_feats=num_pos_feats)
    assert pos.shape == (B, 2 * num_pos_feats, H, W), pos.shape
    assert jnp.allclose(pos, ref, rtol=1e-5, atol=1e-5), (
        float(jnp.max(jnp.abs(pos - ref))))

    # 2) normalize=True, mask=None.
    pos_n = jax.block_until_ready(
        position_embedding_sine(x, num_pos_feats=num_pos_feats, normalize=True))
    ref_n = _reference(x, num_pos_feats=num_pos_feats, normalize=True)
    assert jnp.allclose(pos_n, ref_n, rtol=1e-5, atol=1e-5), (
        float(jnp.max(jnp.abs(pos_n - ref_n))))

    # 3) Real boolean padding mask, normalize=True (typical DETR usage).
    mask = jax.random.bernoulli(km, 0.3, (B, H, W))
    pos_m = jax.block_until_ready(
        position_embedding_sine(x, mask, num_pos_feats=num_pos_feats,
                                normalize=True))
    ref_m = _reference(x, mask, num_pos_feats=num_pos_feats, normalize=True)
    assert jnp.allclose(pos_m, ref_m, rtol=1e-5, atol=1e-5), (
        float(jnp.max(jnp.abs(pos_m - ref_m))))

    print("KERNEL_OK")
</pallas_src>

<mosaic_0001>
module attributes {stable_mosaic.version = 11 : i64} {
  func.func @_sine_embed_kernel(%arg0: i32, %arg1: i32, %arg2: memref<1x1x256xf32, #tpu.memory_space<vmem>>, %arg3: memref<1x1x256xf32, #tpu.memory_space<vmem>>, %arg4: memref<32x1xf32, #tpu.memory_space<vmem>>, %arg5: memref<32x1xf32, #tpu.memory_space<vmem>>, %arg6: memref<32x1xf32, #tpu.memory_space<vmem>>, %arg7: memref<1x32x256xf32, #tpu.memory_space<vmem>>) attributes {dimension_semantics = [#tpu.dimension_semantics<parallel>, #tpu.dimension_semantics<parallel>], iteration_bounds = array<i64: 1, 1>, scalar_prefetch = 0 : i64, scratch_operands = 0 : i64, tpu.core_type = #tpu.core_type<tc>, window_params = [{transform_indices = @transform_0, window_bounds = array<i64: 1, 1, 256>}, {transform_indices = @transform_1, window_bounds = array<i64: 1, 1, 256>}, {transform_indices = @transform_2, window_bounds = array<i64: 32, 1>}, {transform_indices = @transform_3, window_bounds = array<i64: 32, 1>}, {transform_indices = @transform_4, window_bounds = array<i64: 32, 1>}, {transform_indices = @transform_5, window_bounds = array<i64: 1, 32, 256>}]} {
    %c0 = arith.constant 0 : index
    %c0_0 = arith.constant 0 : index
    %c0_1 = arith.constant 0 : index
    %0 = vector.load %arg2[%c0, %c0_0, %c0_1] : memref<1x1x256xf32, #tpu.memory_space<vmem>>, vector<1x1x256xf32>
    %1 = vector.shape_cast %0 : vector<1x1x256xf32> to vector<1x256xf32>
    %c0_2 = arith.constant 0 : index
    %c0_3 = arith.constant 0 : index
    %c0_4 = arith.constant 0 : index
    %2 = vector.load %arg3[%c0_2, %c0_3, %c0_4] : memref<1x1x256xf32, #tpu.memory_space<vmem>>, vector<1x1x256xf32>
    %3 = vector.shape_cast %2 : vector<1x1x256xf32> to vector<1x256xf32>
    %c0_5 = arith.constant 0 : index
    %c0_6 = arith.constant 0 : index
    %4 = vector.load %arg4[%c0_5, %c0_6] : memref<32x1xf32, #tpu.memory_space<vmem>>, vector<32x1xf32>
    %5 = vector.broadcast %1 : vector<1x256xf32> to vector<32x256xf32>
    %6 = vector.broadcast %4 : vector<32x1xf32> to vector<32x256xf32>
    %7 = arith.mulf %5, %6 : vector<32x256xf32>
    %c0_7 = arith.constant 0 : index
    %c0_8 = arith.constant 0 : index
    %8 = vector.load %arg5[%c0_7, %c0_8] : memref<32x1xf32, #tpu.memory_space<vmem>>, vector<32x1xf32>
    %9 = vector.broadcast %3 : vector<1x256xf32> to vector<32x256xf32>
    %10 = vector.broadcast %8 : vector<32x1xf32> to vector<32x256xf32>
    %11 = arith.mulf %9, %10 : vector<32x256xf32>
    %12 = arith.addf %7, %11 : vector<32x256xf32>
    %c0_9 = arith.constant 0 : index
    %c0_10 = arith.constant 0 : index
    %13 = vector.load %arg6[%c0_9, %c0_10] : memref<32x1xf32, #tpu.memory_space<vmem>>, vector<32x1xf32>
    %14 = vector.broadcast %13 : vector<32x1xf32> to vector<32x256xf32>
    %15 = arith.addf %12, %14 : vector<32x256xf32>
    %16 = math.sin %15 : vector<32x256xf32>
    %c0_11 = arith.constant 0 : index
    %c0_12 = arith.constant 0 : index
    %c0_13 = arith.constant 0 : index
    %17 = vector.load %arg7[%c0_11, %c0_12, %c0_13] : memref<1x32x256xf32, #tpu.memory_space<vmem>>, vector<1x32x256xf32>
    %18 = vector.shape_cast %17 : vector<1x32x256xf32> to vector<32x256xf32>
    %19 = vector.shape_cast %16 : vector<32x256xf32> to vector<1x32x256xf32>
    tpu.vector_store %arg7[%c0_11, %c0_12, %c0_13], %19 {strides = array<i32>} : memref<1x32x256xf32, #tpu.memory_space<vmem>>, vector<1x32x256xf32>,
    return
  }
  func.func @transform_0(%arg0: i32, %arg1: i32) -> (i32, i32, i32) {
    %c0_i32 = arith.constant 0 : i32
    %c0_i32_0 = arith.constant 0 : i32
    %c0_i32_1 = arith.constant 0 : i32
    return %arg0, %c0_i32, %c0_i32_0 : i32, i32, i32
  }
  func.func @transform_1(%arg0: i32, %arg1: i32) -> (i32, i32, i32) {
    %c0_i32 = arith.constant 0 : i32
    %c0_i32_0 = arith.constant 0 : i32
    %c0_i32_1 = arith.constant 0 : i32
    return %arg0, %c0_i32, %c0_i32_0 : i32, i32, i32
  }
  func.func @transform_2(%arg0: i32, %arg1: i32) -> (i32, i32) {
    %c0_i32 = arith.constant 0 : i32
    %c0_i32_0 = arith.constant 0 : i32
    return %arg1, %c0_i32 : i32, i32
  }
  func.func @transform_3(%arg0: i32, %arg1: i32) -> (i32, i32) {
    %c0_i32 = arith.constant 0 : i32
    %c0_i32_0 = arith.constant 0 : i32
    return %arg1, %c0_i32 : i32, i32
  }
  func.func @transform_4(%arg0: i32, %arg1: i32) -> (i32, i32) {
    %c0_i32 = arith.constant 0 : i32
    %c0_i32_0 = arith.constant 0 : i32
    return %arg1, %c0_i32 : i32, i32
  }
  func.func @transform_5(%arg0: i32, %arg1: i32) -> (i32, i32, i32) {
    %c0_i32 = arith.constant 0 : i32
    %c0_i32_0 = arith.constant 0 : i32
    return %arg0, %arg1, %c0_i32 : i32, i32, i32
  }
}

</mosaic_0001>

<bundles_post_ra>
// kernel: tpu_custom_call.1
= control target key start
LH: loop header
LB: loop body
LE: loop exit
PB: predicated region body
PF: predicated region fallthrough
CT: control target
= control target key end

     0   :  { %v1135_v2 = vmov 0   ;;  %s1830_s0 = inlined_call_operand.vmem [shape: f32[1,1,256], index: 0, kind: input, shape index: {}]   ;;  %s1831_s1 = inlined_call_operand.vmem [shape: f32[1,1,256], index: 1, kind: input, shape index: {}]   ;;  %s1832_s2 = inlined_call_operand.vmem [shape: f32[32,1], index: 2, kind: input, shape index: {}]   ;;  %s1833_s3 = inlined_call_operand.vmem [shape: f32[32,1], index: 3, kind: input, shape index: {}]   ;;  %s1834_s4 = inlined_call_operand.vmem [shape: f32[32,1], index: 4, kind: input, shape index: {}]   ;;  %s1835_s5 = inlined_call_operand.hbm [shape: f32[1,32,256], index: 5, kind: output, shape index: {}]  }
   0x1   :  { %v25_v0 = vld [vmem:[%s1832_s2 + $0x10] sm:$0xff]  ;;  %v23_v1 = vld [vmem:[%s1832_s2] sm:$0xff]  ;;  %1080 = vset.pattern.permute.xlu1 %v1135_v2  ;;  %1079 = vset.pattern.permute.xlu0 %v1135_v2  ;;  %v26_v3 = vld [vmem:[%s1832_s2 + $0x18] sm:$0xff] }
   0x2   :  { %50 = vperm.xlu1 %1080, %v25_v0   ;;  %40 = vperm.xlu0 %1079, %v23_v1   ;;  %v24_v4 = vld [vmem:[%s1832_s2 + $0x8] sm:$0xff] }
   0x3   :  { %10 = vsyncpa [#allocation3], 0  ;;  %v67_v5 = vld [vmem:[%s1833_s3 + $0x8] sm:$0xff]  ;;  %v66_v6 = vld [vmem:[%s1833_s3] sm:$0xff]  ;;  %v28_v13 = vlaneseq }
   0x4   :  { %v69_v7 = vld [vmem:[%s1833_s3 + $0x18] sm:$0xff]  ;;  %v68_v8 = vld [vmem:[%s1833_s3 + $0x10] sm:$0xff]  ;;  %v118_v9 = vld [vmem:[%s1834_s4 + $0x8] sm:$0xff] }
   0x5   :  { %v117_v10 = vld [vmem:[%s1834_s4] sm:$0xff]  ;;  %v120_v11 = vld [vmem:[%s1834_s4 + $0x18] sm:$0xff]  ;;  %v119_v12 = vld [vmem:[%s1834_s4 + $0x10] sm:$0xff]  ;;  %v29_v14 = vshrl.u32 %v28_v13, 7 }
   0x6   :  { %55 = vperm.xlu1 %1080, %v26_v3   ;;  %45 = vperm.xlu0 %1079, %v24_v4   ;;  %v21_v17 = vld [vmem:[%s1830_s0] sm:$0x3]  ;;  %s1142_s0 = smov [#allocation2]  }
   0x7   :  { %v30_v15 = vsub.s32 0, %v29_v14  ;;  %v34_v16 = vsub.s32 1, %v29_v14  ;;  %v22_v24 = vld [vmem:[%s1831_s1] sm:$0x3]  ;;  %s994_s1 = sshll.u32 %s1142_s0, 4  ;;  %s995_s1 = int_to_ptr.vmem [resolvable:$true] %s994_s1 }
   0x8   :  { %s1113_s4 = scalar_lea.vmem %s995_s1, 1024  ;;  %p1118_p1 = scmp.lt.s32.totalorder %s995_s1, %s995_s1 }
   0x9   :  { %v31_v18 = vrot.slane %v21_v17, %v30_v15  ;;  %v35_v19 = vrot.slane %v21_v17, %v34_v16  ;;  %v74_v29 = vrot.slane %v22_v24, %v30_v15  ;;  %v78_v30 = vrot.slane %v22_v24, %v34_v16  ;;  %p1114_p0 = scmp.ne.s32.totalorder %s995_s1, %s1113_s4  ;;  %p1119_p2 = scmp.lt.s32.totalorder %s1113_s4, %s1113_s4 }
   0xa   :  { %88 = vperm.xlu1 %1080, %v67_v5   ;;  %83 = vperm.xlu0 %1079, %v66_v6  }
   0xb   :  { %p1120_p3 = por %p1119_p2, %p1118_p1 }
   0xd   :  { %p1121_p4 = pnand %p1120_p3, %p1114_p0 }
   0xe   :  { %98 = vperm.xlu1 %1080, %v69_v7   ;;  %93 = vperm.xlu0 %1079, %v68_v8  }
  0x12   :  { %128 = vperm.xlu1 %1080, %v118_v9   ;;  %123 = vperm.xlu0 %1079, %v117_v10  }
  0x16   :  { %138 = vperm.xlu1 %1080, %v120_v11   ;;  %133 = vperm.xlu0 %1079, %v119_v12  }
  0x7d   :  { %v51_v20 = vpop.permute.xlu1 %50  ;;  %v41_v21 = vpop.permute.xlu0 %40 }
  0x7e   :  { %v62_v22 = vmul.f32 %v51_v20, %v31_v18  ;;  %v63_v23 = vmul.f32 %v51_v20, %v35_v19  ;;  %v58_v44 = vmul.f32 %v41_v21, %v31_v18  ;;  %v59_v62 = vmul.f32 %v41_v21, %v35_v19 }
  0x81   :  { %v56_v25 = vpop.permute.xlu1 %55  ;;  %v46_v26 = vpop.permute.xlu0 %45 }
  0x82   :  { %v64_v27 = vmul.f32 %v56_v25, %v31_v18  ;;  %v65_v28 = vmul.f32 %v56_v25, %v35_v19  ;;  %v60_v35 = vmul.f32 %v46_v26, %v31_v18  ;;  %v61_v36 = vmul.f32 %v46_v26, %v35_v19 }
  0x83   :  { %v1136_v25 = vmov 683565275  }
  0x85   :  { %v89_v31 = vpop.permute.xlu1 %88  ;;  %v84_v32 = vpop.permute.xlu0 %83 }
  0x86   :  { %v103_v33 = vmul.f32 %v89_v31, %v74_v29  ;;  %v104_v34 = vmul.f32 %v89_v31, %v78_v30  ;;  %v101_v37 = vmul.f32 %v84_v32, %v74_v29  ;;  %v102_v57 = vmul.f32 %v84_v32, %v78_v30 }
  0x87   :  { %v1138_v31 = vmov 2131351028  }
  0x88   :  { %v111_v45 = vadd.f32 %v103_v33, %v60_v35  ;;  %v112_v46 = vadd.f32 %v104_v34, %v61_v36  ;;  %v109_v53 = vadd.f32 %v101_v37, %v58_v44  ;;  %v110_v5 = vadd.f32 %v102_v57, %v59_v62 }
  0x89   :  { %v99_v38 = vpop.permute.xlu1 %98  ;;  %v94_v39 = vpop.permute.xlu0 %93  ;;  %v1139_v33 = vmov 2102212464   ;;  %v1140_v35 = vmov 920167782  }
  0x8a   :  { %v107_v40 = vmul.f32 %v99_v38, %v74_v29  ;;  %v108_v41 = vmul.f32 %v99_v38, %v78_v30  ;;  %v105_v42 = vmul.f32 %v94_v39, %v74_v29  ;;  %v106_v43 = vmul.f32 %v94_v39, %v78_v30 }
  0x8b   :  { %v1137_v29 = vmov 2475754826  }
  0x8c   :  { %v1217_v47 = vadd.f32 %v107_v40, %v64_v27  ;;  %v1219_v48 = vadd.f32 %v108_v41, %v65_v28  ;;  %v1221_v49 = vadd.f32 %v105_v42, %v62_v22  ;;  %v1223_v50 = vadd.f32 %v106_v43, %v63_v23 }
  0x8d   :  { %v129_v51 = vpop.permute.xlu1 %128  ;;  %v124_v52 = vpop.permute.xlu0 %123  ;;  %v1141_v42 = vmov 1326507024  }
  0x8e   :  { %v1225_v54 = vadd.f32 %v129_v51, %v111_v45  ;;  %v1227_v55 = vadd.f32 %v129_v51, %v112_v46  ;;  %v1229_v56 = vadd.f32 %v124_v52, %v109_v53  ;;  %v1240_v10 = vadd.f32 %v124_v52, %v110_v5 }
  0x90   :  { %v357_v58 = vand.u32 2147483647, %v1225_v54  ;;  %v360_v59 = vand.u32 2139095040, %v1225_v54  ;;  %v461_v60 = vand.u32 2147483647, %v1227_v55  ;;  %v464_v61 = vand.u32 2139095040, %v1227_v55 }
  0x91   :  { %v152_v3 = vand.u32 2139095040, %v1229_v56  ;;  %v149_v13 = vand.u32 2147483647, %v1229_v56  ;;  %v256_v23 = vand.u32 2139095040, %v1240_v10  ;;  %vm359_vm13 = vcmp.lt.s32.totalorder %v1225_v54, 0 }
  0x92   :  { %v361_v63 = vshrl.u32 %v360_v59, 23  ;;  %v364_v0 = vand.u32 8388607, %v357_v58  ;;  %v465_v1 = vshrl.u32 %v464_v61, 23  ;;  %v468_v2 = vand.u32 8388607, %v461_v60 }
  0x93   :  { %v153_v7 = vshrl.u32 %v152_v3, 23  ;;  %v1249_v21 = vand.u32 8388607, %v149_v13  ;;  %vm1339_vm14 = vcmp.le.f32.partialorder %v357_v58, 0.7853982  ;;  %vm463_vm15 = vcmp.lt.s32.totalorder %v1227_v55, 0 }
  0x94   :  { %v1013_v4 = vadd.s32 4294967169, %v361_v63  ;;  %v1017_v6 = vadd.s32 4294967169, %v465_v1  ;;  %v365_v8 = vor.u32 8388608, %v364_v0  ;;  %v469_v11 = vor.u32 8388608, %v468_v2 }
  0x95   :  { %v1005_v14 = vadd.s32 4294967169, %v153_v7 }
  0x96   :  { %v367_v9 = vadd.s32 1, %v1013_v4  ;;  %v471_v12 = vadd.s32 1, %v1017_v6  ;;  %v1243_v18 = vshll.u32 %v365_v8, 8  ;;  %v1245_v20 = vshll.u32 %v469_v11, 8 }
  0x97   :  { %v1251_v22 = vadd.s32 1, %v1005_v14 }
  0x98   :  { %vm368_vm0 = vcmp.gt.s32.totalorder %v367_v9, 0  ;;  %vm472_vm1 = vcmp.gt.s32.totalorder %v471_v12, 0 }
  0x99   :  { %v369_v15 = vsel %vm368_vm0, %v367_v9, 0  ;;  %v473_v19 = vsel %vm472_vm1, %v471_v12, 0  ;;  %vm160_vm6 = vcmp.gt.s32.totalorder %v1251_v22, 0 }
  0x9a   :  { %v370_v16 = vshrl.u32 %v369_v15, 5  ;;  %v371_v17 = vand.u32 31, %v369_v15  ;;  %v1255_v27 = vshrl.u32 %v473_v19, 5  ;;  %v475_v28 = vand.u32 31, %v473_v19 }
  0x9c   :  { %v372_v24 = vsub.s32 32, %v371_v17  ;;  %v374_v26 = vshll.u32 %v1136_v25, %v371_v17  ;;  %v377_v30 = vshll.u32 %v1137_v29, %v371_v17  ;;  %v380_v32 = vshll.u32 %v1138_v31, %v371_v17 }
  0x9d   :  { %v383_v34 = vshll.u32 %v1139_v33, %v371_v17  ;;  %v386_v36 = vshll.u32 %v1140_v35, %v371_v17  ;;  %vm389_vm2 = vcmp.lt.s32.totalorder %v370_v16, 1  ;;  %vm390_vm3 = vcmp.lt.s32.totalorder %v370_v16, 2 }
  0x9e   :  { %v375_v37 = vshrl.u32 %v1137_v29, %v372_v24  ;;  %v378_v38 = vshrl.u32 %v1138_v31, %v372_v24  ;;  %v381_v39 = vshrl.u32 %v1139_v33, %v372_v24  ;;  %v373_v40 = vshrl.u32 %v1136_v25, %v372_v24 }
  0x9f   :  { %v384_v41 = vshrl.u32 %v1140_v35, %v372_v24  ;;  %v387_v43 = vshrl.u32 %v1141_v42, %v372_v24  ;;  %v476_v51 = vsub.s32 32, %v475_v28  ;;  %vm391_vm4 = vcmp.lt.s32.totalorder %v370_v16, 3 }
  0xa0   :  { %v376_v44 = vor.u32 %v375_v37, %v374_v26  ;;  %v379_v45 = vor.u32 %v378_v38, %v377_v30  ;;  %v382_v46 = vor.u32 %v381_v39, %v380_v32  ;;  %vm392_vm5 = vcmp.lt.s32.totalorder %v370_v16, 4 }
  0xa1   :  { %v385_v52 = vor.u32 %v384_v41, %v383_v34  ;;  %v388_v53 = vor.u32 %v387_v43, %v386_v36  ;;  %v478_v2 = vshll.u32 %v1136_v25, %v475_v28  ;;  %v479_v5 = vshrl.u32 %v1137_v29, %v476_v51 }
  0xa2   :  { %v393_v57 = vsel %vm389_vm2, %v373_v40, %v376_v44  ;;  %v394_v59 = vsel %vm392_vm5, %v382_v46, 2102212464  ;;  %v397_v61 = vsel %vm389_vm2, %v376_v44, %v379_v45  ;;  %v401_v62 = vsel %vm389_vm2, %v379_v45, %v382_v46 }
  0xa3   :  { %v395_v63 = vsel %vm391_vm4, %v379_v45, %v394_v59  ;;  %v398_v0 = vsel %vm392_vm5, %v385_v52, 920167782  ;;  %v402_v1 = vsel %vm392_vm5, %v388_v53, 1326507024  ;;  %v481_v6 = vshll.u32 %v1137_v29, %v475_v28 }
  0xa4   :  { %v399_v3 = vsel %vm391_vm4, %v382_v46, %v398_v0  ;;  %v403_v4 = vsel %vm391_vm4, %v385_v52, %v402_v1  ;;  %v396_v7 = vsel %vm390_vm3, %v393_v57, %v395_v63  ;;  %v482_v11 = vshrl.u32 %v1138_v31, %v476_v51 }
  0xa5   :  { %v400_v8 = vsel %vm390_vm3, %v397_v61, %v399_v3  ;;  %v404_v9 = vsel %vm390_vm3, %v401_v62, %v403_v4  ;;  %v480_v19 = vor.u32 %v479_v5, %v478_v2  ;;  %v484_v26 = vshll.u32 %v1138_v31, %v475_v28 }
  0xa6   :  { %v1279_v12 = vmul.u32.u64.low %v1243_v18, %v404_v9  ;;  %v1280_v14 = vmul.u32.u64.high %v1243_v18, %v404_v9, %v1279_v12  ;;  %v1283_v15 = vmul.u32.u64.low %v1243_v18, %v400_v8  ;;  %v1284_v17 = vmul.u32.u64.high %v1243_v18, %v400_v8, %v1283_v15 }
  0xa7   :  { %v483_v24 = vor.u32 %v482_v11, %v481_v6  ;;  %v485_v30 = vshrl.u32 %v1139_v33, %v476_v51  ;;  %v477_v32 = vshrl.u32 %v1136_v25, %v476_v51  ;;  %v487_v16 = vshll.u32 %v1139_v33, %v475_v28 }
  0xa8   :  { %v488_v34 = vshrl.u32 %v1140_v35, %v476_v51  ;;  %v491_v36 = vshrl.u32 %v1141_v42, %v476_v51  ;;  %v412_v37 = vmul.u32 %v1243_v18, %v396_v7  ;;  %v490_v39 = vshll.u32 %v1140_v35, %v475_v28 }
  0xa9   :  { %v486_v38 = vor.u32 %v485_v30, %v484_v26  ;;  %vm493_vm7 = vcmp.lt.s32.totalorder %v1255_v27, 1  ;;  %vm414_vm8 = vc.u32 %v1280_v14, %v1283_v15  ;;  %v415_v40 = vadd.s32 1, %v1284_v17 }
  0xaa   :  { %v489_v41 = vor.u32 %v488_v34, %v487_v16  ;;  %vm494_vm9 = vcmp.lt.s32.totalorder %v1255_v27, 2  ;;  %v492_v43 = vor.u32 %v491_v36, %v490_v39  ;;  %vm495_vm10 = vcmp.lt.s32.totalorder %v1255_v27, 3 }
  0xab   :  { %vm496_vm11 = vcmp.lt.s32.totalorder %v1255_v27, 4  ;;  %v501_v44 = vsel %vm493_vm7, %v480_v19, %v483_v24  ;;  %v416_v18 = vsel %vm414_vm8, %v415_v40, %v1284_v17  ;;  %v505_v28 = vsel %vm493_vm7, %v483_v24, %v486_v38 }
  0xac   :  { %v498_v45 = vsel %vm496_vm11, %v486_v38, 2102212464  ;;  %v502_v46 = vsel %vm496_vm11, %v489_v41, 920167782  ;;  %v417_v51 = vadd.s32 %v416_v18, %v412_v37  ;;  %v497_v52 = vsel %vm493_vm7, %v477_v32, %v480_v19 }
  0xad   :  { %v503_v53 = vsel %vm495_vm10, %v486_v38, %v502_v46  ;;  %v506_v57 = vsel %vm496_vm11, %v492_v43, 1326507024  ;;  %v499_v59 = vsel %vm495_vm10, %v483_v24, %v498_v45  ;;  %v161_v63 = vsel %vm160_vm6, %v1251_v22, 0 }
  0xae   :  { %v504_v61 = vsel %vm494_vm9, %v501_v44, %v503_v53  ;;  %v507_v62 = vsel %vm495_vm10, %v489_v41, %v506_v57  ;;  %v418_v0 = vadd.s32 536870912, %v417_v51  ;;  %v253_v6 = vand.u32 2147483647, %v1240_v10 }
  0xaf   :  { %v508_v1 = vsel %vm494_vm9, %v505_v28, %v507_v62  ;;  %v1309_v2 = vmul.u32.u64.low %v1245_v20, %v504_v61  ;;  %v1310_v3 = vmul.u32.u64.high %v1245_v20, %v504_v61, %v1309_v2  ;;  %v500_v8 = vsel %vm494_vm9, %v497_v52, %v499_v59 }
  0xb0   :  { %v1314_v4 = vmul.u32.u64.low %v1245_v20, %v508_v1  ;;  %v1315_v5 = vmul.u32.u64.high %v1245_v20, %v508_v1, %v1314_v4  ;;  %v419_v7 = vshrl.u32 %v418_v0, 30  ;;  %v157_v22 = vor.u32 8388608, %v1249_v21 }
  0xb1   :  { %v163_v9 = vand.u32 31, %v161_v63  ;;  %v519_v12 = vadd.s32 1, %v1310_v3  ;;  %v257_v19 = vshrl.u32 %v256_v23, 23  ;;  %v516_v24 = vmul.u32 %v1245_v20, %v500_v8 }
  0xb2   :  { %v420_v11 = vshll.u32 %v419_v7, 30  ;;  %vm518_vm12 = vc.u32 %v1315_v5, %v1309_v2  ;;  %v1329_v26 = vand.u32 8388607, %v253_v6  ;;  %v1335_v30 = vshll.u32 %v157_v22, 8 }
  0xb3   :  { %v164_v17 = vsub.s32 32, %v163_v9  ;;  %v520_v27 = vsel %vm518_vm12, %v519_v12, %v1310_v3  ;;  %v413_v20 = vadd.s32 %v1283_v15, %v1280_v14  ;;  %v1344_v16 = vshrl.u32 %v161_v63, 5 }
  0xb4   :  { %v1332_v21 = vsub.s32 %v417_v51, %v420_v11  ;;  %v521_v32 = vadd.s32 %v520_v27, %v516_v24  ;;  %v1009_v39 = vadd.s32 4294967169, %v257_v19  ;;  %v443_v40 = vsub.s32 4, %v419_v7 }
  0xb5   :  { %v167_v34 = vshrl.u32 %v1137_v29, %v164_v17  ;;  %v170_v37 = vshrl.u32 %v1138_v31, %v164_v17  ;;  %v173_v38 = vshrl.u32 %v1139_v33, %v164_v17  ;;  %v166_v58 = vshll.u32 %v1136_v25, %v163_v9 }
  0xb6   :  { %v423_v36 = vsub.s32 0, %v1332_v21  ;;  %v522_v41 = vadd.s32 536870912, %v521_v32  ;;  %v261_v43 = vor.u32 8388608, %v1329_v26  ;;  %v169_v15 = vshll.u32 %v1137_v29, %v163_v9 }
  0xb7   :  { %v172_v44 = vshll.u32 %v1138_v31, %v163_v9  ;;  %v176_v18 = vshrl.u32 %v1140_v35, %v164_v17  ;;  %v168_v46 = vor.u32 %v167_v34, %v166_v58  ;;  %v175_v28 = vshll.u32 %v1139_v33, %v163_v9 }
  0xb8   :  { %v1014_v14 = vmin.u32 %v423_v36, %v1332_v21  ;;  %v523_v45 = vshrl.u32 %v522_v41, 30  ;;  %v179_v51 = vshrl.u32 %v1141_v42, %v164_v17  ;;  %v171_v53 = vor.u32 %v170_v37, %v169_v15 }
  0xb9   :  { %v174_v57 = vor.u32 %v173_v38, %v172_v44  ;;  %v178_v59 = vshll.u32 %v1140_v35, %v163_v9  ;;  %v444_v61 = vsel %vm359_vm13, %v443_v40, %v419_v7  ;;  %v177_v63 = vor.u32 %v176_v18, %v175_v28 }
  0xba   :  { %v425_v52 = vclz %v1014_v14  ;;  %v524_v62 = vshll.u32 %v523_v45, 30  ;;  %vm181_vm0 = vcmp.lt.s32.totalorder %v1344_v16, 1  ;;  %vm182_vm1 = vcmp.lt.s32.totalorder %v1344_v16, 2 }
  0xbb   :  { %v180_v1 = vor.u32 %v179_v51, %v178_v59  ;;  %vm184_vm2 = vcmp.lt.s32.totalorder %v1344_v16, 4  ;;  %v165_v4 = vshrl.u32 %v1136_v25, %v164_v17  ;;  %vm183_vm3 = vcmp.lt.s32.totalorder %v1344_v16, 3 }
  0xbc   :  { %v1015_v0 = vadd.s32 4294967294, %v425_v52  ;;  %v1365_v3 = vsub.s32 %v521_v32, %v524_v62  ;;  %v190_v8 = vsel %vm184_vm2, %v177_v63, 920167782  ;;  %v446_v7 = vsel %vm1339_vm14, 0, %v444_v61 }
  0xbd   :  { %vm1375_vm5 = vcmp.le.f32.partialorder %v461_v60, 0.7853982  ;;  %v189_v9 = vsel %vm181_vm0, %v168_v46, %v171_v53  ;;  %v191_v11 = vsel %vm183_vm3, %v174_v57, %v190_v8  ;;  %v547_v19 = vsub.s32 4, %v523_v45 }
  0xbe   :  { %vm1016_vm4 = vcmp.lt.s32.totalorder %v1015_v0, 0  ;;  %v527_v17 = vsub.s32 0, %v1365_v3  ;;  %v193_v24 = vsel %vm181_vm0, %v171_v53, %v174_v57  ;;  %v186_v60 = vsel %vm184_vm2, %v174_v57, 2102212464 }
  0xbf   :  { %v428_v12 = vsel %vm1016_vm4, 0, %v1015_v0  ;;  %v194_v34 = vsel %vm184_vm2, %v180_v1, 1326507024  ;;  %v192_v38 = vsel %vm182_vm1, %v189_v9, %v191_v11  ;;  %v263_v15 = vadd.s32 1, %v1009_v39 }
  0xc0   :  { %v429_v27 = vsub.s32 32, %v428_v12  ;;  %v433_v32 = vsub.s32 4294967266, %v428_v12  ;;  %v430_v36 = vshll.u32 %v1332_v21, %v428_v12  ;;  %v1018_v37 = vmin.u32 %v527_v17, %v1365_v3 }
  0xc1   :  { %v195_v40 = vsel %vm183_vm3, %v177_v63, %v194_v34  ;;  %v1400_v18 = vsel %vm463_vm15, %v547_v19, %v523_v45  ;;  %v185_v21 = vsel %vm181_vm0, %v165_v4, %v168_v46  ;;  %v187_v28 = vsel %vm183_vm3, %v171_v53, %v186_v60 }
  0xc2   :  { %v431_v41 = vshrl.u32 %v413_v20, %v429_v27  ;;  %v434_v58 = vadd.s32 127, %v433_v32  ;;  %v196_v14 = vsel %vm182_vm1, %v193_v24, %v195_v40  ;;  %v529_v44 = vclz %v1018_v37 }
  0xc3   :  { %v1407_v20 = vmul.u32.u64.low %v1335_v30, %v196_v14  ;;  %v1408_v57 = vmul.u32.u64.high %v1335_v30, %v196_v14, %v1407_v20  ;;  %v1411_v39 = vmul.u32.u64.low %v1335_v30, %v192_v38  ;;  %v1412_v61 = vmul.u32.u64.high %v1335_v30, %v192_v38, %v1411_v39 }
  0xc4   :  { %v432_v51 = vor.u32 %v431_v41, %v430_v36  ;;  %v435_v52 = vshll.u32 %v434_v58, 23  ;;  %v1019_v59 = vadd.s32 4294967294, %v529_v44  ;;  %vm264_vm6 = vcmp.gt.s32.totalorder %v263_v15, 0 }
  0xc5   :  { %v517_v46 = vadd.s32 %v1309_v2, %v1315_v5  ;;  %v188_v53 = vsel %vm182_vm1, %v185_v21, %v187_v28  ;;  %v265_v62 = vsel %vm264_vm6, %v263_v15, 0  ;;  %v450_v63 = vadd.s32 3, %v446_v7 }
  0xc6   :  { %v436_v45 = vor.u32 4788187, %v435_v52  ;;  %vm1020_vm7 = vcmp.lt.s32.totalorder %v1019_v59, 0  ;;  %v550_v0 = vsel %vm1375_vm5, 0, %v1400_v18  ;;  %v267_v1 = vand.u32 31, %v265_v62 }
  0xc7   :  { %v439_v8 = vcvt.s32.f32 %v432_v51  ;;  %v532_v9 = vsel %vm1020_vm7, 0, %v1019_v59  ;;  %vm206_vm8 = vc.u32 %v1408_v57, %v1411_v39  ;;  %v204_v2 = vmul.u32 %v1335_v30, %v188_v53 }
  0xc8   :  { %v437_v4 = vand.u32 2147483647, %v436_v45  ;;  %v533_v11 = vsub.s32 32, %v532_v9  ;;  %v537_v12 = vsub.s32 4294967266, %v532_v9  ;;  %v207_v5 = vadd.s32 1, %v1412_v61 }
  0xc9   :  { %v534_v7 = vshll.u32 %v1365_v3, %v532_v9  ;;  %v1427_v17 = vshrl.u32 %v265_v62, 5  ;;  %v268_v19 = vsub.s32 32, %v267_v1  ;;  %v270_v60 = vshll.u32 %v1136_v25, %v267_v1 }
  0xca   :  { %v440_v16 = vmul.f32 %v439_v8, %v437_v4  ;;  %v535_v24 = vshrl.u32 %v517_v46, %v533_v11  ;;  %v538_v27 = vadd.s32 127, %v537_v12  ;;  %v208_v32 = vsel %vm206_vm8, %v207_v5, %v1412_v61 }
  0xcb   :  { %v209_v36 = vadd.s32 %v208_v32, %v204_v2  ;;  %v271_v37 = vshrl.u32 %v1137_v29, %v268_v19  ;;  %v273_v30 = vshll.u32 %v1137_v29, %v267_v1  ;;  %v274_v41 = vshrl.u32 %v1138_v31, %v268_v19 }
  0xcc   :  { %v441_v34 = vxor.u32 2147483648, %v440_v16  ;;  %v536_v38 = vor.u32 %v535_v24, %v534_v7  ;;  %v539_v40 = vshll.u32 %v538_v27, 23  ;;  %v277_v3 = vshrl.u32 %v1139_v33, %v268_v19 }
  0xcd   :  { %v210_v14 = vadd.s32 536870912, %v209_v36  ;;  %v272_v15 = vor.u32 %v271_v37, %v270_v60  ;;  %v276_v44 = vshll.u32 %v1138_v31, %v267_v1  ;;  %v279_v51 = vshll.u32 %v1139_v33, %v267_v1 }
  0xce   :  { %v442_v58 = vsel %vm359_vm13, %v441_v34, %v440_v16  ;;  %v540_v21 = vor.u32 4788187, %v539_v40  ;;  %v543_v28 = vcvt.s32.f32 %v536_v38  ;;  %v275_v20 = vor.u32 %v274_v41, %v273_v30 }
  0xcf   :  { %v445_v18 = vsel %vm1339_vm14, %v1225_v54, %v442_v58  ;;  %v1442_v52 = vshrl.u32 %v210_v14, 30  ;;  %v280_v59 = vshrl.u32 %v1140_v35, %v268_v19  ;;  %v278_v45 = vor.u32 %v277_v3, %v276_v44 }
  0xd0   :  { %1081 = vcosq.f32 %v445_v18  ;;  %v541_v61 = vand.u32 2147483647, %v540_v21  ;;  %v283_v46 = vshrl.u32 %v1141_v42, %v268_v19  ;;  %v1446_v53 = vand.u32 3, %v450_v63 }
  0xd1   :  { %1083 = vsinq.f32 %v445_v18  ;;  %v212_v23 = vshll.u32 %v1442_v52, 30  ;;  %v281_v62 = vor.u32 %v280_v59, %v279_v51  ;;  %v554_v8 = vadd.s32 3, %v550_v0 }
  0xd2   :  { %v544_v4 = vmul.f32 %v543_v28, %v541_v61  ;;  %v282_v9 = vshll.u32 %v1140_v35, %v267_v1  ;;  %v1452_v11 = vshll.u32 %v261_v43, 8  ;;  %v269_v2 = vshrl.u32 %v1136_v25, %v268_v19 }
  0xd3   :  { %v1454_v12 = vsub.s32 %v209_v36, %v212_v23  ;;  %vm285_vm9 = vcmp.lt.s32.totalorder %v1427_v17, 1  ;;  %vm288_vm10 = vcmp.lt.s32.totalorder %v1427_v17, 4  ;;  %vm286_vm11 = vcmp.lt.s32.totalorder %v1427_v17, 2  ;;  %v139_v36 = vpop.permute.xlu1 %138 }
  0xd4   :  { %v545_v63 = vxor.u32 2147483648, %v544_v4  ;;  %v284_v5 = vor.u32 %v283_v46, %v282_v9  ;;  %v290_v16 = vsel %vm288_vm10, %v278_v45, 2102212464  ;;  %v293_v0 = vsel %vm285_vm9, %v272_v15, %v275_v20 }
  0xd5   :  { %v215_v26 = vsub.s32 0, %v1454_v12  ;;  %vm287_vm12 = vcmp.lt.s32.totalorder %v1427_v17, 3  ;;  %v294_v43 = vsel %vm288_vm10, %v281_v62, 920167782  ;;  %v289_v7 = vsel %vm285_vm9, %v269_v2, %v272_v15 }
  0xd6   :  { %v546_v1 = vsel %vm463_vm15, %v545_v63, %v544_v4  ;;  %v291_v19 = vsel %vm287_vm12, %v275_v20, %v290_v16  ;;  %v295_v24 = vsel %vm287_vm12, %v278_v45, %v294_v43  ;;  %v297_v34 = vsel %vm285_vm9, %v275_v20, %v278_v45 }
  0xd7   :  { %v549_v27 = vsel %vm1375_vm5, %v1227_v55, %v546_v1  ;;  %v1006_v32 = vmin.u32 %v215_v26, %v1454_v12  ;;  %v296_v60 = vsel %vm286_vm11, %v293_v0, %v295_v24  ;;  %v298_v37 = vsel %vm288_vm10, %v284_v5, 1326507024 }
  0xd8   :  { %1085 = vcosq.f32 %v549_v27  ;;  %v1487_v30 = vmul.u32.u64.low %v1452_v11, %v296_v60  ;;  %v1488_v38 = vmul.u32.u64.high %v1452_v11, %v296_v60, %v1487_v30  ;;  %vm449_vm13 = vweird.f32 %v1225_v54 }
  0xd9   :  { %vm452_vm14 = vcmp.lt.s32.totalorder %v1446_v53, 2  ;;  %1087 = vsinq.f32 %v549_v27  ;;  %vm151_vm15 = vcmp.lt.s32.totalorder %v1229_v56, 0  ;;  %v217_v22 = vclz %v1006_v32 }
  0xda   :  { %vm453_vm0 = vcmp.eq.s32.totalorder %v1446_v53, 0  ;;  %v235_v40 = vsub.s32 4, %v1442_v52  ;;  %v299_v41 = vsel %vm287_vm12, %v281_v62, %v298_v37  ;;  %v1499_v3 = vadd.f32 %v139_v36, %v1217_v47 }
  0xdb   :  { %vm456_vm1 = vcmp.eq.s32.totalorder %v1446_v53, 2  ;;  %v1007_v58 = vadd.s32 4294967294, %v217_v22  ;;  %v292_v14 = vsel %vm286_vm11, %v289_v7, %v291_v19  ;;  %v300_v15 = vsel %vm286_vm11, %v297_v34, %v299_v41 }
  0xdc   :  { %v555_v18 = vand.u32 3, %v554_v8  ;;  %v205_v21 = vadd.s32 %v1411_v39, %v1408_v57  ;;  %v1509_v28 = vmul.u32.u64.low %v1452_v11, %v300_v15  ;;  %v1510_v51 = vmul.u32.u64.high %v1452_v11, %v300_v15, %v1509_v28 }
  0xdd   :  { %v1082_v44 = vpop.eup %1081  ;;  %vm1008_vm2 = vcmp.lt.s32.totalorder %v1007_v58, 0  ;;  %v311_v59 = vadd.s32 1, %v1488_v38  ;;  %v776_v61 = vand.u32 2139095040, %v1499_v3  ;;  %v236_v17 = vsel %vm151_vm15, %v235_v40, %v1442_v52 }
  0xde   :  { %v1084_v47 = vpop.eup %1083  ;;  %v457_v20 = vxor.u32 2147483648, %v1082_v44  ;;  %v220_v46 = vsel %vm1008_vm2, 0, %v1007_v58  ;;  %v308_v23 = vmul.u32 %v1452_v11, %v292_v14  ;;  %v773_v4 = vand.u32 2147483647, %v1499_v3 }
  0xdf   :  { %v454_v45 = vxor.u32 2147483648, %v1084_v47  ;;  %v221_v39 = vsub.s32 32, %v220_v46  ;;  %v225_v62 = vsub.s32 4294967266, %v220_v46  ;;  %v222_v9 = vshll.u32 %v1454_v12, %v220_v46 }
  0xe0   :  { %v458_v57 = vsel %vm456_vm1, %v457_v20, %v1084_v47  ;;  %vm310_vm3 = vc.u32 %v1510_v51, %v1487_v30  ;;  %v777_v2 = vshrl.u32 %v776_v61, 23  ;;  %vm1533_vm4 = vcmp.le.f32.partialorder %v149_v13, 0.7853982 }
  0xe1   :  { %v455_v8 = vsel %vm453_vm0, %v1082_v44, %v454_v45  ;;  %v223_v11 = vshrl.u32 %v205_v21, %v221_v39  ;;  %v226_v63 = vadd.s32 127, %v225_v62  ;;  %v312_v5 = vsel %vm310_vm3, %v311_v59, %v1488_v38 }
  0xe2   :  { %v459_v52 = vsel %vm452_vm14, %v455_v8, %v458_v57  ;;  %v313_v12 = vadd.s32 %v312_v5, %v308_v23  ;;  %v1029_v26 = vadd.s32 4294967169, %v777_v2  ;;  %v238_v53 = vsel %vm1533_vm4, 0, %v236_v17 }
  0xe3   :  { %v460_v16 = vsel %vm449_vm13, nan, %v459_v52  ;;  %v224_v43 = vor.u32 %v223_v11, %v222_v9  ;;  %v227_v1 = vshll.u32 %v226_v63, 23  ;;  %v1540_v19 = vadd.f32 %v139_v36, %v1219_v48 }
  0xe4   :  { %983 = vst [vmem:[#allocation2 + $0x10] sm:$0xff] %v460_v16  ;;  %v314_v7 = vadd.s32 536870912, %v313_v12  ;;  %v780_v54 = vand.u32 8388607, %v773_v4  ;;  %v783_v24 = vadd.s32 1, %v1029_v26  ;;  %vm557_vm5 = vcmp.eq.s32.totalorder %v555_v18, 0 }
  0xe5   :  { %v1086_v13 = vpop.eup %1085  ;;  %vm560_vm6 = vcmp.eq.s32.totalorder %v555_v18, 2  ;;  %v228_v27 = vor.u32 4788187, %v227_v1  ;;  %v242_v34 = vadd.s32 3, %v238_v53  ;;  %v231_v40 = vcvt.s32.f32 %v224_v43 }
  0xe6   :  { %v1088_v32 = vpop.eup %1087  ;;  %v561_v60 = vxor.u32 2147483648, %v1086_v13  ;;  %v1544_v37 = vshrl.u32 %v314_v7, 30  ;;  %vm784_vm7 = vcmp.gt.s32.totalorder %v783_v24, 0  ;;  %v781_v58 = vor.u32 8388608, %v780_v54 }
  0xe7   :  { %v558_v38 = vxor.u32 2147483648, %v1088_v32  ;;  %v229_v22 = vand.u32 2147483647, %v228_v27  ;;  %v785_v41 = vsel %vm784_vm7, %v783_v24, 0  ;;  %v880_v14 = vand.u32 2139095040, %v1540_v19 }
  0xe8   :  { %v562_v48 = vsel %vm560_vm6, %v561_v60, %v1088_v32  ;;  %v316_v36 = vshll.u32 %v1544_v37, 30  ;;  %vm556_vm8 = vcmp.lt.s32.totalorder %v555_v18, 2  ;;  %v787_v21 = vand.u32 31, %v785_v41 }
  0xe9   :  { %v559_v15 = vsel %vm557_vm5, %v1086_v13, %v558_v38  ;;  %v232_v44 = vmul.f32 %v231_v40, %v229_v22  ;;  %vm553_vm9 = vweird.f32 %v1227_v55  ;;  %v1550_v47 = vand.u32 3, %v242_v34 }
  0xea   :  { %v563_v28 = vsel %vm556_vm8, %v559_v15, %v562_v48  ;;  %v1552_v20 = vsub.s32 %v313_v12, %v316_v36  ;;  %v309_v45 = vadd.s32 %v1487_v30, %v1510_v51  ;;  %v788_v46 = vsub.s32 32, %v787_v21 }
  0xeb   :  { %v564_v59 = vsel %vm553_vm9, nan, %v563_v28  ;;  %v233_v61 = vxor.u32 2147483648, %v232_v44  ;;  %v1557_v18 = vshll.u32 %v781_v58, 8  ;;  %v877_v23 = vand.u32 2147483647, %v1540_v19 }
  0xec   :  { %984 = vst [vmem:[#allocation2 + $0x18] sm:$0xff] %v564_v59  ;;  %v319_v17 = vsub.s32 0, %v1552_v20  ;;  %v881_v57 = vshrl.u32 %v880_v14, 23  ;;  %v339_v39 = vsub.s32 4, %v1544_v37  ;;  %v791_v62 = vshrl.u32 %v1137_v29, %v788_v46 }
  0xed   :  { %v234_v55 = vsel %vm151_vm15, %v233_v61, %v232_v44  ;;  %v794_v8 = vshrl.u32 %v1138_v31, %v788_v46  ;;  %v786_v9 = vshrl.u32 %v785_v41, 5  ;;  %v790_v2 = vshll.u32 %v1136_v25, %v787_v21 }
  0xee   :  { %v237_v30 = vsel %vm1533_vm4, %v1229_v56, %v234_v55  ;;  %v1010_v51 = vmin.u32 %v319_v17, %v1552_v20  ;;  %v793_v52 = vshll.u32 %v1137_v29, %v787_v21  ;;  %v796_v11 = vshll.u32 %v1138_v31, %v787_v21 }
  0xef   :  { %1089 = vcosq.f32 %v237_v30  ;;  %v797_v63 = vshrl.u32 %v1139_v33, %v788_v46  ;;  %v792_v16 = vor.u32 %v791_v62, %v790_v2  ;;  %v1033_v12 = vadd.s32 4294967169, %v881_v57 }
  0xf0   :  { %1091 = vsinq.f32 %v237_v30  ;;  %v321_v5 = vclz %v1010_v51  ;;  %v795_v26 = vor.u32 %v794_v8, %v793_v52  ;;  %v799_v0 = vshll.u32 %v1139_v33, %v787_v21 }
  0xf1   :  { %v798_v43 = vor.u32 %v797_v63, %v796_v11  ;;  %v800_v1 = vshrl.u32 %v1140_v35, %v788_v46  ;;  %v789_v7 = vshrl.u32 %v1136_v25, %v788_v46  ;;  %v802_v54 = vshll.u32 %v1140_v35, %v787_v21 }
  0xf2   :  { %v1011_v53 = vadd.s32 4294967294, %v321_v5  ;;  %v803_v24 = vshrl.u32 %v1141_v42, %v788_v46  ;;  %vm255_vm10 = vcmp.lt.s32.totalorder %v1240_v10, 0  ;;  %vm805_vm11 = vcmp.lt.s32.totalorder %v786_v9, 1 }
  0xf3   :  { %v801_v13 = vor.u32 %v800_v1, %v799_v0  ;;  %vm807_vm12 = vcmp.lt.s32.totalorder %v786_v9, 3  ;;  %vm808_vm13 = vcmp.lt.s32.totalorder %v786_v9, 4  ;;  %v809_v32 = vsel %vm805_vm11, %v789_v7, %v792_v16 }
  0xf4   :  { %vm1012_vm14 = vcmp.lt.s32.totalorder %v1011_v53, 0  ;;  %v804_v27 = vor.u32 %v803_v24, %v802_v54  ;;  %v810_v60 = vsel %vm808_vm13, %v798_v43, 2102212464  ;;  %v813_v22 = vsel %vm805_vm11, %v792_v16, %v795_v26 }
  0xf5   :  { %v324_v34 = vsel %vm1012_vm14, 0, %v1011_v53  ;;  %v811_v38 = vsel %vm807_vm12, %v795_v26, %v810_v60  ;;  %v814_v40 = vsel %vm808_vm13, %v801_v13, 920167782  ;;  %vm1584_vm15 = vcmp.le.f32.partialorder %v253_v6, 0.7853982 }
  0xf6   :  { %v325_v48 = vsub.s32 32, %v324_v34  ;;  %v329_v36 = vsub.s32 4294967266, %v324_v34  ;;  %vm806_vm0 = vcmp.lt.s32.totalorder %v786_v9, 2  ;;  %v817_v58 = vsel %vm805_vm11, %v795_v26, %v798_v43 }
  0xf7   :  { %v326_v14 = vshll.u32 %v1552_v20, %v324_v34  ;;  %v812_v15 = vsel %vm806_vm0, %v809_v32, %v811_v38  ;;  %v815_v44 = vsel %vm807_vm12, %v798_v43, %v814_v40  ;;  %v818_v21 = vsel %vm808_vm13, %v804_v27, 1326507024 }
  0xf8   :  { %v327_v28 = vshrl.u32 %v309_v45, %v325_v48  ;;  %v330_v59 = vadd.s32 127, %v329_v36  ;;  %v816_v61 = vsel %vm806_vm0, %v813_v22, %v815_v44  ;;  %v819_v46 = vsel %vm807_vm12, %v801_v13, %v818_v21  ;;  %v134_v21 = vpop.permute.xlu0 %133 }
  0xf9   :  { %vm241_vm1 = vweird.f32 %v1229_v56  ;;  %v820_v6 = vsel %vm806_vm0, %v817_v58, %v819_v46  ;;  %v1594_v17 = vmul.u32.u64.low %v1557_v18, %v816_v61  ;;  %v1595_v57 = vmul.u32.u64.high %v1557_v18, %v816_v61, %v1594_v17 }
  0xfa   :  { %v887_v55 = vadd.s32 1, %v1033_v12  ;;  %v328_v20 = vor.u32 %v327_v28, %v326_v14  ;;  %v331_v62 = vshll.u32 %v330_v59, 23  ;;  %vm244_vm2 = vcmp.lt.s32.totalorder %v1550_v47, 2 }
  0xfb   :  { %v1599_v8 = vmul.u32.u64.low %v1557_v18, %v820_v6  ;;  %v1600_v30 = vmul.u32.u64.high %v1557_v18, %v820_v6, %v1599_v8  ;;  %vm245_vm3 = vcmp.eq.s32.totalorder %v1550_v47, 0  ;;  %vm248_vm4 = vcmp.eq.s32.totalorder %v1550_v47, 2 }
  0xfc   :  { %vm888_vm5 = vcmp.gt.s32.totalorder %v887_v55, 0  ;;  %v1090_v45 = vpop.eup %1089  ;;  %v332_v51 = vor.u32 4788187, %v331_v62  ;;  %v340_v9 = vsel %vm255_vm10, %v339_v39, %v1544_v37  ;;  %v884_v2 = vand.u32 8388607, %v877_v23 }
  0xfd   :  { %v889_v52 = vsel %vm888_vm5, %v887_v55, 0  ;;  %v1092_v11 = vpop.eup %1091  ;;  %v249_v63 = vxor.u32 2147483648, %v1090_v45  ;;  %v828_v5 = vmul.u32 %v1557_v18, %v812_v15  ;;  %v831_v16 = vadd.s32 1, %v1595_v57 }
  0xfe   :  { %v891_v12 = vand.u32 31, %v889_v52  ;;  %v246_v26 = vxor.u32 2147483648, %v1092_v11  ;;  %v333_v43 = vand.u32 2147483647, %v332_v51  ;;  %v335_v0 = vcvt.s32.f32 %v328_v20 }
  0xff   :  { %vm830_vm6 = vc.u32 %v1600_v30, %v1594_v17  ;;  %v250_v37 = vsel %vm248_vm4, %v249_v63, %v1092_v11  ;;  %v342_v39 = vsel %vm1584_vm15, 0, %v340_v9  ;;  %v885_v24 = vor.u32 8388608, %v884_v2 }
 0x100   :  { %v832_v1 = vsel %vm830_vm6, %v831_v16, %v1595_v57  ;;  %v892_v53 = vsub.s32 32, %v891_v12  ;;  %v247_v18 = vsel %vm245_vm3, %v1090_v45, %v246_v26  ;;  %v336_v7 = vmul.f32 %v335_v0, %v333_v43 }
 0x101   :  { %v833_v54 = vadd.s32 %v832_v1, %v828_v5  ;;  %v251_v13 = vsel %vm244_vm2, %v247_v18, %v250_v37  ;;  %v894_v27 = vshll.u32 %v1136_v25, %v891_v12  ;;  %v890_v40 = vshrl.u32 %v889_v52, 5 }
 0x102   :  { %v895_v32 = vshrl.u32 %v1137_v29, %v892_v53  ;;  %v898_v60 = vshrl.u32 %v1138_v31, %v892_v53  ;;  %v252_v34 = vsel %vm241_vm1, nan, %v251_v13  ;;  %v337_v38 = vxor.u32 2147483648, %v336_v7 }
 0x103   :  { %v834_v22 = vadd.s32 536870912, %v833_v54  ;;  %981 = vst [vmem:[#allocation2] sm:$0xff] %v252_v34  ;;  %v897_v36 = vshll.u32 %v1137_v29, %v891_v12  ;;  %v900_v58 = vshll.u32 %v1138_v31, %v891_v12  ;;  %v901_v47 = vshrl.u32 %v1139_v33, %v892_v53 }
 0x104   :  { %v896_v48 = vor.u32 %v895_v32, %v894_v27  ;;  %v338_v14 = vsel %vm255_vm10, %v337_v38, %v336_v7  ;;  %v903_v44 = vshll.u32 %v1139_v33, %v891_v12  ;;  %v904_v56 = vshrl.u32 %v1140_v35, %v892_v53 }
 0x105   :  { %v835_v15 = vshrl.u32 %v834_v22, 30  ;;  %v341_v28 = vsel %vm1584_vm15, %v1240_v10, %v338_v14  ;;  %v899_v59 = vor.u32 %v898_v60, %v897_v36  ;;  %v906_v61 = vshll.u32 %v1140_v35, %v891_v12 }
 0x106   :  { %v907_v46 = vshrl.u32 %v1141_v42, %v892_v53  ;;  %1093 = vcosq.f32 %v341_v28  ;;  %v902_v57 = vor.u32 %v901_v47, %v900_v58  ;;  %v905_v55 = vor.u32 %v904_v56, %v903_v44 }
 0x107   :  { %v836_v6 = vshll.u32 %v835_v15, 30  ;;  %1095 = vsinq.f32 %v341_v28  ;;  %v346_v20 = vadd.s32 3, %v342_v39  ;;  %v1643_v8 = vadd.f32 %v134_v21, %v1221_v49 }
 0x108   :  { %v908_v62 = vor.u32 %v907_v46, %v906_v61  ;;  %vm909_vm7 = vcmp.lt.s32.totalorder %v890_v40, 1  ;;  %vm912_vm8 = vcmp.lt.s32.totalorder %v890_v40, 4  ;;  %v925_v41 = vshll.u32 %v885_v24, 8 }
 0x109   :  { %v1645_v45 = vsub.s32 %v833_v54, %v836_v6  ;;  %v893_v51 = vshrl.u32 %v1136_v25, %v892_v53  ;;  %vm911_vm9 = vcmp.lt.s32.totalorder %v890_v40, 3  ;;  %v917_v9 = vsel %vm909_vm7, %v896_v48, %v899_v59 }
 0x10a   :  { %v918_v2 = vsel %vm912_vm8, %v905_v55, 920167782  ;;  %vm910_vm10 = vcmp.lt.s32.totalorder %v890_v40, 2  ;;  %v914_v11 = vsel %vm912_vm8, %v902_v57, 2102212464  ;;  %v859_v5 = vsub.s32 4, %v835_v15 }
 0x10b   :  { %v839_v52 = vsub.s32 0, %v1645_v45  ;;  %v919_v63 = vsel %vm911_vm9, %v902_v57, %v918_v2  ;;  %v921_v16 = vsel %vm909_vm7, %v899_v59, %v902_v57  ;;  %v922_v12 = vsel %vm912_vm8, %v908_v62, 1326507024 }
 0x10c   :  { %v920_v49 = vsel %vm910_vm10, %v917_v9, %v919_v63  ;;  %v347_v26 = vand.u32 3, %v346_v20  ;;  %v913_v0 = vsel %vm909_vm7, %v893_v51, %v896_v48  ;;  %v923_v37 = vsel %vm911_vm9, %v905_v55, %v922_v12 }
 0x10d   :  { %v1030_v43 = vmin.u32 %v839_v52, %v1645_v45  ;;  %v915_v39 = vsel %vm911_vm9, %v899_v59, %v914_v11  ;;  %v924_v1 = vsel %vm910_vm10, %v921_v16, %v923_v37  ;;  %vm775_vm11 = vcmp.lt.s32.totalorder %v1499_v3, 0 }
 0x10e   :  { %v1655_v53 = vmul.u32.u64.low %v925_v41, %v920_v49  ;;  %v1656_v18 = vmul.u32.u64.high %v925_v41, %v920_v49, %v1655_v53  ;;  %v860_v54 = vsel %vm775_vm11, %v859_v5, %v835_v15  ;;  %v568_v27 = vand.u32 2139095040, %v1643_v8 }
 0x10f   :  { %v841_v7 = vclz %v1030_v43  ;;  %v1662_v24 = vmul.u32.u64.low %v925_v41, %v924_v1  ;;  %v1663_v13 = vmul.u32.u64.high %v925_v41, %v924_v1, %v1662_v24  ;;  %vm1668_vm12 = vcmp.le.f32.partialorder %v773_v4, 0.7853982 }
 0x110   :  { %v916_v34 = vsel %vm910_vm10, %v913_v0, %v915_v39  ;;  %v1674_v38 = vadd.f32 %v134_v21, %v1223_v50  ;;  %vm349_vm13 = vcmp.eq.s32.totalorder %v347_v26, 0  ;;  %vm352_vm14 = vcmp.eq.s32.totalorder %v347_v26, 2 }
 0x111   :  { %v1031_v60 = vadd.s32 4294967294, %v841_v7  ;;  %v935_v22 = vadd.s32 1, %v1656_v18  ;;  %v569_v48 = vshrl.u32 %v568_v27, 23  ;;  %v829_v36 = vadd.s32 %v1594_v17, %v1600_v30 }
 0x112   :  { %v862_v4 = vsel %vm1668_vm12, 0, %v860_v54  ;;  %v565_v58 = vand.u32 2147483647, %v1643_v8  ;;  %v932_v14 = vmul.u32 %v925_v41, %v916_v34  ;;  %vm934_vm0 = vc.u32 %v1663_v13, %v1655_v53 }
 0x113   :  { %vm1032_vm15 = vcmp.lt.s32.totalorder %v1031_v60, 0  ;;  %v1094_v47 = vpop.eup %1093  ;;  %v1021_v50 = vadd.s32 4294967169, %v569_v48  ;;  %v672_v28 = vand.u32 2139095040, %v1674_v38  ;;  %v936_v59 = vsel %vm934_vm0, %v935_v22, %v1656_v18 }
 0x114   :  { %v844_v40 = vsel %vm1032_vm15, 0, %v1031_v60  ;;  %v1096_v15 = vpop.eup %1095  ;;  %v353_v44 = vxor.u32 2147483648, %v1094_v47  ;;  %v937_v55 = vadd.s32 %v936_v59, %v932_v14  ;;  %vm345_vm1 = vweird.f32 %v1240_v10 }
 0x115   :  { %v845_v56 = vsub.s32 32, %v844_v40  ;;  %v849_v21 = vsub.s32 4294967266, %v844_v40  ;;  %v350_v17 = vxor.u32 2147483648, %v1096_v15  ;;  %v846_v30 = vshll.u32 %v1645_v45, %v844_v40 }
 0x116   :  { %v575_v61 = vadd.s32 1, %v1021_v50  ;;  %v354_v46 = vsel %vm352_vm14, %v353_v44, %v1096_v15  ;;  %vm348_vm2 = vcmp.lt.s32.totalorder %v347_v26, 2  ;;  %v938_v9 = vadd.s32 536870912, %v937_v55 }
 0x117   :  { %v847_v6 = vshrl.u32 %v829_v36, %v845_v56  ;;  %v850_v57 = vadd.s32 127, %v849_v21  ;;  %v351_v20 = vsel %vm349_vm13, %v1094_v47, %v350_v17  ;;  %v866_v45 = vadd.s32 3, %v862_v4 }
 0x118   :  { %vm576_vm3 = vcmp.gt.s32.totalorder %v575_v61, 0  ;;  %v355_v62 = vsel %vm348_vm2, %v351_v20, %v354_v46  ;;  %v572_v52 = vand.u32 8388607, %v565_v58  ;;  %v1692_v5 = vshrl.u32 %v938_v9, 30 }
 0x119   :  { %v848_v41 = vor.u32 %v847_v6, %v846_v30  ;;  %v851_v51 = vshll.u32 %v850_v57, 23  ;;  %v356_v2 = vsel %vm345_vm1, nan, %v355_v62  ;;  %v577_v11 = vsel %vm576_vm3, %v575_v61, 0 }
 0x11a   :  { %982 = vst [vmem:[#allocation2 + $0x8] sm:$0xff] %v356_v2  ;;  %v669_v10 = vand.u32 2147483647, %v1674_v38  ;;  %v673_v49 = vshrl.u32 %v672_v28, 23  ;;  %v579_v16 = vand.u32 31, %v577_v11  ;;  %v940_v43 = vshll.u32 %v1692_v5, 30 }
 0x11b   :  { %v852_v63 = vor.u32 4788187, %v851_v51  ;;  %v855_v26 = vcvt.s32.f32 %v848_v41  ;;  %v1696_v0 = vand.u32 3, %v866_v45  ;;  %v573_v37 = vor.u32 8388608, %v572_v52 }
 0x11c   :  { %v580_v39 = vsub.s32 32, %v579_v16  ;;  %v1698_v18 = vsub.s32 %v937_v55, %v940_v43  ;;  %v1025_v7 = vadd.s32 4294967169, %v673_v49  ;;  %v1702_v54 = vand.u32 8388607, %v669_v10 }
 0x11d   :  { %v853_v12 = vand.u32 2147483647, %v852_v63  ;;  %v578_v24 = vshrl.u32 %v577_v11, 5  ;;  %v582_v27 = vshll.u32 %v1136_v25, %v579_v16  ;;  %v585_v36 = vshll.u32 %v1137_v29, %v579_v16 }
 0x11e   :  { %v583_v60 = vshrl.u32 %v1137_v29, %v580_v39  ;;  %v586_v34 = vshrl.u32 %v1138_v31, %v580_v39  ;;  %v943_v48 = vsub.s32 0, %v1698_v18  ;;  %v589_v4 = vshrl.u32 %v1139_v33, %v580_v39 }
 0x11f   :  { %v856_v1 = vmul.f32 %v855_v26, %v853_v12  ;;  %v588_v40 = vshll.u32 %v1138_v31, %v579_v16  ;;  %v591_v14 = vshll.u32 %v1139_v33, %v579_v16  ;;  %v592_v50 = vshrl.u32 %v1140_v35, %v580_v39 }
 0x120   :  { %v584_v47 = vor.u32 %v583_v60, %v582_v27  ;;  %v1034_v44 = vmin.u32 %v943_v48, %v1698_v18  ;;  %v587_v56 = vor.u32 %v586_v34, %v585_v36  ;;  %v594_v21 = vshll.u32 %v1140_v35, %v579_v16 }
 0x121   :  { %v857_v22 = vxor.u32 2147483648, %v856_v1  ;;  %v590_v17 = vor.u32 %v589_v4, %v588_v40  ;;  %v593_v30 = vor.u32 %v592_v50, %v591_v14  ;;  %v595_v59 = vshrl.u32 %v1141_v42, %v580_v39 }
 0x122   :  { %v933_v61 = vadd.s32 %v1655_v53, %v1663_v13  ;;  %v945_v46 = vclz %v1034_v44  ;;  %v679_v6 = vadd.s32 1, %v1025_v7  ;;  %v581_v57 = vshrl.u32 %v1136_v25, %v580_v39 }
 0x123   :  { %v858_v15 = vsel %vm775_vm11, %v857_v22, %v856_v1  ;;  %v596_v55 = vor.u32 %v595_v59, %v594_v21  ;;  %vm597_vm4 = vcmp.lt.s32.totalorder %v578_v24, 1  ;;  %vm599_vm5 = vcmp.lt.s32.totalorder %v578_v24, 3 }
 0x124   :  { %v861_v28 = vsel %vm1668_vm12, %v1499_v3, %v858_v15  ;;  %v1035_v20 = vadd.s32 4294967294, %v945_v46  ;;  %vm600_vm6 = vcmp.lt.s32.totalorder %v578_v24, 4  ;;  %v605_v32 = vsel %vm597_vm4, %v584_v47, %v587_v56 }
 0x125   :  { %1097 = vcosq.f32 %v861_v28  ;;  %v602_v62 = vsel %vm600_vm6, %v590_v17, 2102212464  ;;  %v606_v41 = vsel %vm600_vm6, %v593_v30, 920167782  ;;  %v609_v51 = vsel %vm597_vm4, %v587_v56, %v590_v17 }
 0x126   :  { %1099 = vsinq.f32 %v861_v28  ;;  %v610_v9 = vsel %vm600_vm6, %v596_v55, 1326507024  ;;  %vm1036_vm7 = vcmp.lt.s32.totalorder %v1035_v20, 0  ;;  %vm598_vm8 = vcmp.lt.s32.totalorder %v578_v24, 2 }
 0x127   :  { %v607_v53 = vsel %vm599_vm5, %v590_v17, %v606_v41  ;;  %v611_v13 = vsel %vm599_vm5, %v593_v30, %v610_v9  ;;  %v948_v2 = vsel %vm1036_vm7, 0, %v1035_v20  ;;  %v613_v11 = vshll.u32 %v573_v37, 8 }
 0x128   :  { %v608_v45 = vsel %vm598_vm8, %v605_v32, %v607_v53  ;;  %v612_v52 = vsel %vm598_vm8, %v609_v51, %v611_v13  ;;  %v949_v63 = vsub.s32 32, %v948_v2  ;;  %v953_v49 = vsub.s32 4294967266, %v948_v2 }
 0x129   :  { %v601_v16 = vsel %vm597_vm4, %v581_v57, %v584_v47  ;;  %v603_v12 = vsel %vm599_vm5, %v587_v56, %v602_v62  ;;  %v1732_v26 = vmul.u32.u64.low %v613_v11, %v612_v52  ;;  %v1733_v43 = vmul.u32.u64.high %v613_v11, %v612_v52, %v1732_v26 }
 0x12a   :  { %v1735_v39 = vmul.u32.u64.low %v613_v11, %v608_v45  ;;  %v1736_v1 = vmul.u32.u64.high %v613_v11, %v608_v45, %v1735_v39  ;;  %v950_v7 = vshll.u32 %v1698_v18, %v948_v2  ;;  %v951_v27 = vshrl.u32 %v933_v61, %v949_v63 }
 0x12b   :  { %v954_v60 = vadd.s32 127, %v953_v49  ;;  %vm680_vm9 = vcmp.gt.s32.totalorder %v679_v6, 0  ;;  %vm879_vm10 = vcmp.lt.s32.totalorder %v1540_v19, 0  ;;  %v963_v37 = vsub.s32 4, %v1692_v5 }
 0x12c   :  { %v604_v34 = vsel %vm598_vm8, %v601_v16, %v603_v12  ;;  %v681_v22 = vsel %vm680_vm9, %v679_v6, 0  ;;  %vm865_vm11 = vweird.f32 %v1499_v3  ;;  %vm868_vm12 = vcmp.lt.s32.totalorder %v1696_v0, 2 }
 0x12d   :  { %v952_v48 = vor.u32 %v951_v27, %v950_v7  ;;  %v955_v36 = vshll.u32 %v954_v60, 23  ;;  %v683_v4 = vand.u32 31, %v681_v22  ;;  %vm869_vm13 = vcmp.eq.s32.totalorder %v1696_v0, 0 }
 0x12e   :  { %vm872_vm14 = vcmp.eq.s32.totalorder %v1696_v0, 2  ;;  %vm622_vm15 = vc.u32 %v1733_v43, %v1735_v39  ;;  %v623_v18 = vadd.s32 1, %v1736_v1  ;;  %vm1752_vm0 = vcmp.le.f32.partialorder %v877_v23, 0.7853982 }
 0x12f   :  { %v956_v47 = vor.u32 4788187, %v955_v36  ;;  %v620_v40 = vmul.u32 %v613_v11, %v604_v34  ;;  %v677_v14 = vor.u32 8388608, %v1702_v54  ;;  %v684_v50 = vsub.s32 32, %v683_v4 }
 0x130   :  { %v959_v44 = vcvt.s32.f32 %v952_v48  ;;  %v964_v56 = vsel %vm879_vm10, %v963_v37, %v1692_v5  ;;  %v624_v21 = vsel %vm622_vm15, %v623_v18, %v1736_v1  ;;  %v1761_v28 = vshrl.u32 %v681_v22, 5 }
 0x131   :  { %v957_v30 = vand.u32 2147483647, %v956_v47  ;;  %v625_v59 = vadd.s32 %v624_v21, %v620_v40  ;;  %v686_v61 = vshll.u32 %v1136_v25, %v683_v4  ;;  %v687_v54 = vshrl.u32 %v1137_v29, %v684_v50 }
 0x132   :  { %v1098_v15 = vpop.eup %1097  ;;  %v690_v6 = vshrl.u32 %v1138_v31, %v684_v50  ;;  %v693_v57 = vshrl.u32 %v1139_v33, %v684_v50  ;;  %v696_v32 = vshrl.u32 %v1140_v35, %v684_v50  ;;  %v689_v41 = vshll.u32 %v1137_v29, %v683_v4 }
 0x133   :  { %v1100_v17 = vpop.eup %1099  ;;  %v873_v23 = vxor.u32 2147483648, %v1098_v15  ;;  %v960_v55 = vmul.f32 %v959_v44, %v957_v30  ;;  %v626_v20 = vadd.s32 536870912, %v625_v59  ;;  %v692_v51 = vshll.u32 %v1138_v31, %v683_v4 }
 0x134   :  { %v870_v46 = vxor.u32 2147483648, %v1100_v17  ;;  %v695_v9 = vshll.u32 %v1139_v33, %v683_v4  ;;  %v688_v45 = vor.u32 %v687_v54, %v686_v61  ;;  %v691_v11 = vor.u32 %v690_v6, %v689_v41 }
 0x135   :  { %v874_v5 = vsel %vm872_vm14, %v873_v23, %v1100_v17  ;;  %v961_v13 = vxor.u32 2147483648, %v960_v55  ;;  %v1777_v2 = vshrl.u32 %v626_v20, 30  ;;  %v698_v63 = vshll.u32 %v1140_v35, %v683_v4 }
 0x136   :  { %v871_v62 = vsel %vm869_vm13, %v1098_v15, %v870_v46  ;;  %v699_v49 = vshrl.u32 %v1141_v42, %v684_v50  ;;  %v694_v33 = vor.u32 %v693_v57, %v692_v51  ;;  %v697_v0 = vor.u32 %v696_v32, %v695_v9 }
 0x137   :  { %v875_v53 = vsel %vm868_vm12, %v871_v62, %v874_v5  ;;  %v962_v29 = vsel %vm879_vm10, %v961_v13, %v960_v55  ;;  %v628_v31 = vshll.u32 %v1777_v2, 30  ;;  %v717_v3 = vshll.u32 %v677_v14, 8 }
 0x138   :  { %v876_v52 = vsel %vm865_vm11, nan, %v875_v53  ;;  %v965_v16 = vsel %vm1752_vm0, %v1540_v19, %v962_v29  ;;  %v700_v12 = vor.u32 %v699_v49, %v698_v63  ;;  %v966_v26 = vsel %vm1752_vm0, 0, %v964_v56 }
 0x139   :  { %987 = vst [vmem:[#allocation2 + $0x30] sm:$0xff] %v876_v52  ;;  %1101 = vcosq.f32 %v965_v16  ;;  %v629_v35 = vsub.s32 %v625_v59, %v628_v31  ;;  %vm701_vm1 = vcmp.lt.s32.totalorder %v1761_v28, 1  ;;  %v685_v42 = vshrl.u32 %v1136_v25, %v684_v50 }
 0x13a   :  { %1103 = vsinq.f32 %v965_v16  ;;  %vm704_vm2 = vcmp.lt.s32.totalorder %v1761_v28, 4  ;;  %v709_v1 = vsel %vm701_vm1, %v688_v45, %v691_v11  ;;  %vm703_vm3 = vcmp.lt.s32.totalorder %v1761_v28, 3 }
 0x13b   :  { %v631_v7 = vsub.s32 0, %v629_v35  ;;  %v706_v27 = vsel %vm704_vm2, %v694_v33, 2102212464  ;;  %v710_v60 = vsel %vm704_vm2, %v697_v0, 920167782  ;;  %vm702_vm4 = vcmp.lt.s32.totalorder %v1761_v28, 2 }
 0x13c   :  { %v711_v37 = vsel %vm703_vm3, %v694_v33, %v710_v60  ;;  %v713_v34 = vsel %vm701_vm1, %v691_v11, %v694_v33  ;;  %v714_v22 = vsel %vm704_vm2, %v700_v12, 1326507024  ;;  %v705_v36 = vsel %vm701_vm1, %v685_v42, %v688_v45 }
 0x13d   :  { %v1022_v48 = vmin.u32 %v631_v7, %v629_v35  ;;  %v712_v4 = vsel %vm702_vm4, %v709_v1, %v711_v37  ;;  %v715_v18 = vsel %vm703_vm3, %v697_v0, %v714_v22  ;;  %v707_v25 = vsel %vm703_vm3, %v691_v11, %v706_v27 }
 0x13e   :  { %v716_v24 = vsel %vm702_vm4, %v713_v34, %v715_v18  ;;  %v1800_v47 = vmul.u32.u64.low %v717_v3, %v712_v4  ;;  %v1801_v40 = vmul.u32.u64.high %v717_v3, %v712_v4, %v1800_v47  ;;  %v970_v50 = vadd.s32 3, %v966_v26 }
 0x13f   :  { %v633_v14 = vclz %v1022_v48  ;;  %v1803_v15 = vmul.u32.u64.low %v717_v3, %v716_v24  ;;  %v1804_v44 = vmul.u32.u64.high %v717_v3, %v716_v24, %v1803_v15  ;;  %v708_v21 = vsel %vm702_vm4, %v705_v36, %v707_v25 }
 0x140   :  { %v727_v17 = vadd.s32 1, %v1801_v40  ;;  %v971_v23 = vand.u32 3, %v970_v50  ;;  %v724_v59 = vmul.u32 %v717_v3, %v708_v21  ;;  %v621_v61 = vadd.s32 %v1735_v39, %v1733_v43 }
 0x141   :  { %v1023_v56 = vadd.s32 4294967294, %v633_v14  ;;  %vm726_vm6 = vc.u32 %v1804_v44, %v1800_v47  ;;  %vm969_vm10 = vweird.f32 %v1540_v19  ;;  %vm567_vm11 = vcmp.lt.s32.totalorder %v1643_v8, 0 }
 0x142   :  { %v728_v6 = vsel %vm726_vm6, %v727_v17, %v1801_v40  ;;  %vm976_vm7 = vcmp.eq.s32.totalorder %v971_v23, 2  ;;  %vm973_vm8 = vcmp.eq.s32.totalorder %v971_v23, 0  ;;  %vm972_vm9 = vcmp.lt.s32.totalorder %v971_v23, 2 }
 0x143   :  { %vm1024_vm5 = vcmp.lt.s32.totalorder %v1023_v56, 0  ;;  %v729_v5 = vadd.s32 %v728_v6, %v724_v59  ;;  %v651_v12 = vsub.s32 4, %v1777_v2  ;;  %vm566_vm12 = vcmp.le.f32.partialorder %v565_v58, 0.7853982 }
 0x144   :  { %v636_v30 = vsel %vm1024_vm5, 0, %v1023_v56  ;;  %v725_v60 = vadd.s32 %v1800_v47, %v1804_v44  ;;  %vm657_vm1 = vweird.f32 %v1643_v8  ;;  %vm671_vm2 = vcmp.lt.s32.totalorder %v1674_v38, 0 }
 0x145   :  { %v637_v46 = vsub.s32 32, %v636_v30  ;;  %v641_v54 = vsub.s32 4294967266, %v636_v30  ;;  %v638_v20 = vshll.u32 %v629_v35, %v636_v30  ;;  %v730_v51 = vadd.s32 536870912, %v729_v5 }
 0x146   :  { %v1102_v57 = vpop.eup %1101  ;;  %v652_v42 = vsel %vm567_vm11, %v651_v12, %v1777_v2  ;;  %vm670_vm3 = vcmp.le.f32.partialorder %v669_v10, 0.7853982 }
 0x147   :  { %v1104_v55 = vpop.eup %1103  ;;  %v977_v28 = vxor.u32 2147483648, %v1102_v57  ;;  %v639_v32 = vshrl.u32 %v621_v61, %v637_v46  ;;  %v642_v62 = vadd.s32 127, %v641_v54  ;;  %v731_v39 = vshrl.u32 %v730_v51, 30 }
 0x148   :  { %v974_v41 = vxor.u32 2147483648, %v1104_v55  ;;  %v654_v7 = vsel %vm566_vm12, 0, %v652_v42 }
 0x149   :  { %v978_v9 = vsel %vm976_vm7, %v977_v28, %v1104_v55  ;;  %v640_v53 = vor.u32 %v639_v32, %v638_v20  ;;  %v643_v13 = vshll.u32 %v642_v62, 23  ;;  %v732_v63 = vshll.u32 %v731_v39, 30 }
 0x14a   :  { %v975_v43 = vsel %vm973_vm8, %v1102_v57, %v974_v41  ;;  %v658_v22 = vadd.s32 3, %v654_v7  ;;  %v755_v30 = vsub.s32 4, %v731_v39  ;;  %vm761_vm7 = vweird.f32 %v1674_v38 }
 0x14b   :  { %v979_v45 = vsel %vm972_vm9, %v975_v43, %v978_v9  ;;  %v644_v52 = vor.u32 4788187, %v643_v13  ;;  %v647_v29 = vcvt.s32.f32 %v640_v53  ;;  %v733_v31 = vsub.s32 %v729_v5, %v732_v63 }
 0x14c   :  { %v980_v11 = vsel %vm969_vm10, nan, %v979_v45  ;;  %v659_v25 = vand.u32 3, %v658_v22  ;;  %v756_v54 = vsel %vm671_vm2, %v755_v30, %v731_v39 }
 0x14d   :  { %988 = vst [vmem:[#allocation2 + $0x38] sm:$0xff] %v980_v11  ;;  %v645_v49 = vand.u32 2147483647, %v644_v52  ;;  %v735_v0 = vsub.s32 0, %v733_v31  ;;  %v758_v6 = vsel %vm670_vm3, 0, %v756_v54 }
 0x14e   :  { %vm664_vm14 = vcmp.eq.s32.totalorder %v659_v25, 2  ;;  %vm661_vm15 = vcmp.eq.s32.totalorder %v659_v25, 0  ;;  %vm660_vm0 = vcmp.lt.s32.totalorder %v659_v25, 2  ;;  %v762_v57 = vadd.s32 3, %v758_v6 }
 0x14f   :  { %v648_v33 = vmul.f32 %v647_v29, %v645_v49  ;;  %v1026_v3 = vmin.u32 %v735_v0, %v733_v31 }
 0x150   :  { %v763_v5 = vand.u32 3, %v762_v57 }
 0x151   :  { %v649_v16 = vxor.u32 2147483648, %v648_v33  ;;  %v737_v35 = vclz %v1026_v3 }
 0x152   :  { %vm768_vm4 = vcmp.eq.s32.totalorder %v763_v5, 2  ;;  %vm765_vm5 = vcmp.eq.s32.totalorder %v763_v5, 0  ;;  %vm764_vm6 = vcmp.lt.s32.totalorder %v763_v5, 2 }
 0x153   :  { %v650_v19 = vsel %vm567_vm11, %v649_v16, %v648_v33  ;;  %v1027_v1 = vadd.s32 4294967294, %v737_v35 }
 0x154   :  { %v653_v26 = vsel %vm566_vm12, %v1643_v8, %v650_v19 }
 0x155   :  { %1105 = vcosq.f32 %v653_v26  ;;  %vm1028_vm13 = vcmp.lt.s32.totalorder %v1027_v1, 0 }
 0x156   :  { %1107 = vsinq.f32 %v653_v26  ;;  %v740_v27 = vsel %vm1028_vm13, 0, %v1027_v1 }
 0x157   :  { %v741_v37 = vsub.s32 32, %v740_v27  ;;  %v745_v34 = vsub.s32 4294967266, %v740_v27  ;;  %v742_v48 = vshll.u32 %v733_v31, %v740_v27 }
 0x159   :  { %v743_v36 = vshrl.u32 %v725_v60, %v741_v37  ;;  %v746_v58 = vadd.s32 127, %v745_v34 }
 0x15b   :  { %v744_v4 = vor.u32 %v743_v36, %v742_v48  ;;  %v747_v18 = vshll.u32 %v746_v58, 23 }
 0x15d   :  { %v748_v24 = vor.u32 4788187, %v747_v18  ;;  %v751_v2 = vcvt.s32.f32 %v744_v4 }
 0x15f   :  { %v749_v14 = vand.u32 2147483647, %v748_v24 }
 0x161   :  { %v752_v21 = vmul.f32 %v751_v2, %v749_v14 }
 0x162   :  { %v1106_v40 = vpop.eup %1105 }
 0x163   :  { %v1108_v50 = vpop.eup %1107  ;;  %v665_v15 = vxor.u32 2147483648, %v1106_v40  ;;  %v753_v17 = vxor.u32 2147483648, %v752_v21 }
 0x164   :  { %v662_v56 = vxor.u32 2147483648, %v1108_v50 }
 0x165   :  { %v666_v47 = vsel %vm664_vm14, %v665_v15, %v1108_v50  ;;  %v754_v61 = vsel %vm671_vm2, %v753_v17, %v752_v21 }
 0x166   :  { %v663_v44 = vsel %vm661_vm15, %v1106_v40, %v662_v56  ;;  %v757_v46 = vsel %vm670_vm3, %v1674_v38, %v754_v61 }
 0x167   :  { %v667_v23 = vsel %vm660_vm0, %v663_v44, %v666_v47  ;;  %1109 = vcosq.f32 %v757_v46 }
 0x168   :  { %v668_v59 = vsel %vm657_vm1, nan, %v667_v23  ;;  %1111 = vsinq.f32 %v757_v46 }
 0x169   :  { %985 = vst [vmem:[#allocation2 + $0x20] sm:$0xff] %v668_v59 }
 0x174   :  { %v1110_v55 = vpop.eup %1109 }
 0x175   :  { %v1112_v8 = vpop.eup %1111  ;;  %v769_v28 = vxor.u32 2147483648, %v1110_v55 }
 0x176   :  { %v766_v20 = vxor.u32 2147483648, %v1112_v8 }
 0x177   :  { %v770_v32 = vsel %vm768_vm4, %v769_v28, %v1112_v8 }
 0x178   :  { %v767_v10 = vsel %vm765_vm5, %v1110_v55, %v766_v20 }
 0x179   :  { %v771_v62 = vsel %vm764_vm6, %v767_v10, %v770_v32 }
 0x17a   :  { %v772_v41 = vsel %vm761_vm7, nan, %v771_v62 }
 0x17b   :  { %986 = vst [vmem:[#allocation2 + $0x28] sm:$0xff] %v772_v41 }
 0x17c   :  { %1124 = shalt.err (!%p1121_p4)
}
 0x17d   :  { %s1143_s19 = smov 256   ;;  %s1144_s20 = smov 16  }
 0x17e   :  { %1000 = dma.vmem_to_hbm [thread:$0]  %s995_s1, 1024, %s1835_s5, [#allocation3], %s1143_s19, %s1143_s19, %s1144_s20  }
 0x17f   :  { %1133 = dma.done.wait [#allocation3], 1024  }
 0x180   :  { %1134 = vsyncadd [#allocation3], 4294966272 }
 0x181   :  { %1004 = vsyncpa [#allocation3], 1 }

</bundles_post_ra>
